<compile_context>
chip_gen: v7x
topology: tpu7x:2x2x1
jax: 0.10.0
libtpu: 0.0.40
codegen_flags: <defaults>
</compile_context>

<pallas_src>
import functools
import math

import jax
import jax.numpy as jnp
from jax.experimental import pallas as pl
from jax.experimental.pallas import tpu as pltpu


def _round_up(v, m):
    return (v + m - 1) // m * m


def _bf16_interp_ok(w):
    # bf16 packs 16 rows per sublane tile -> layout-free (H,W,TP)->(HW,TP)
    # merge needs W % 16 == 0.  v5e has no bf16 VALU, keep the f32 build there.
    if w % 16 != 0:
        return False
    try:
        kind = jax.devices()[0].device_kind.lower()
    except Exception:
        kind = ""
    if "v5 lite" in kind or "v5e" in kind:
        return False
    return True


# -----------------------------------------------------------------------------
# Kernel 1: offset-independent per-tap projection, emitted directly in the
# (Coutp, dg*K2*HW) layout consumed by the fused DCN matmul.
#   x_ref: (1, Cin, HW) f32
#   w_ref: (taps_pb, Coutp, Cin) f32  (deformable-group block-masked)
#   out_ref: (1, Coutp, taps_pb*HW) bf16
# -----------------------------------------------------------------------------
def _z_kernel(x_ref, w_ref, out_ref, *, hw, taps_pb):
    for t in range(taps_pb):
        zt = jnp.dot(w_ref[t], x_ref[0],
                     preferred_element_type=jnp.float32).astype(out_ref.dtype)
        out_ref[0, :, pl.ds(t * hw, hw)] = zt


# -----------------------------------------------------------------------------
# Kernel 2: fused shared offset/mask conv + deformable sampling + projection
# for one (batch, P-tile) grid step.
#   dil_ref:   (B,) int32 in SMEM (scalar prefetch) -- per-image dilation
#   xcols_ref: (1, K2*Cin, TP) f32   im2col of x (offset-conv input, dilation 1)
#   woff_ref:  (OMpad, K2*Cin) f32   offset/mask conv weight
#   z_ref:     (1, Coutp, dg*K2*HW) bf16
#   out_ref:   (1, Coutp, TP) f32
#   scratch (optional): (dg*K2*HW, TP) bf16 VMEM for the stacked interp tiles
# -----------------------------------------------------------------------------
def _dcn_kernel(dil_ref, xcols_ref, woff_ref, z_ref, out_ref, *scratch,
                H, W, Wo, K, stride, dgroups, cout_p, use_stacked, bf16_interp):
    K2 = K * K
    HW = H * W
    dg = dgroups
    TP = out_ref.shape[-1]
    b = pl.program_id(0)

    # ---- fused shared offset/mask conv (raw, pre-sigmoid) -------------------
    om = jnp.dot(woff_ref[...], xcols_ref[0],
                 preferred_element_type=jnp.float32)            # (OMpad, TP)
    # offset = cat(o1, o2) == om[:2*dg*K2] (channel-wise no-op); mask rows follow
    msk = jax.nn.sigmoid(om[2 * dg * K2:3 * dg * K2])           # (dg*K2, TP)

    # ---- per-branch dilation / padding (runtime scalar from SMEM) -----------
    dil_f = dil_ref[b].astype(jnp.float32)
    pad_f = dil_f if K == 3 else 0.0

    # ---- output-pixel coordinates for this lane tile ------------------------
    p0 = pl.program_id(1) * TP
    pcol = jax.lax.broadcasted_iota(jnp.int32, (1, TP), 1) + p0
    oy = (pcol // Wo).astype(jnp.float32)                       # (1, TP)
    ox = (pcol % Wo).astype(jnp.float32)
    base_y = oy * stride - pad_f
    base_x = ox * stride - pad_f

    h_in = jax.lax.broadcasted_iota(jnp.int32, (H, 1), 0).astype(jnp.float32)
    w_in = jax.lax.broadcasted_iota(jnp.int32, (W, 1), 0).astype(jnp.float32)

    def tap_interp(g, i, j):
        k_idx = i * K + j
        cy = g * 2 * K2 + 2 * k_idx
        off_y = om[cy:cy + 1, :]                                # (1, TP)
        off_x = om[cy + 1:cy + 2, :]
        m = msk[g * K2 + k_idx:g * K2 + k_idx + 1, :]           # (1, TP)
        py = base_y + i * dil_f + off_y
        px = base_x + j * dil_f + off_x
        wy = jnp.maximum(1.0 - jnp.abs(h_in - py), 0.0)         # (H, TP)
        wx = jnp.maximum(1.0 - jnp.abs(w_in - px), 0.0) * m     # mask folded in
        if bf16_interp:
            wy_b = wy.astype(jnp.bfloat16)
            wx_b = wx.astype(jnp.bfloat16)
            return (wy_b[:, None, :] * wx_b[None, :, :]).reshape(HW, TP)
        return (wy[:, None, :] * wx[None, :, :]).reshape(HW, TP).astype(jnp.bfloat16)

    z = z_ref[0]                                                # (Coutp, dg*K2*HW) bf16

    if use_stacked:
        # stack all masked interp tiles and do ONE skinny MXU dot
        sbuf = scratch[0]                                       # (dg*K2*HW, TP) bf16
        for g in range(dg):
            for i in range(K):
                for j in range(K):
                    t = g * K2 + i * K + j
                    sbuf[pl.ds(t * HW, HW), :] = tap_interp(g, i, j)
        out_ref[0] = jnp.dot(z, sbuf[...], preferred_element_type=jnp.float32)
    else:
        # pure dot-accumulate chain (no per-tap epilogue multiplies)
        acc = jnp.zeros((cout_p, TP), jnp.float32)
        for g in range(dg):
            for i in range(K):
                for j in range(K):
                    t = g * K2 + i * K + j
                    interp = tap_interp(g, i, j)
                    acc = acc + jnp.dot(z[:, t * HW:(t + 1) * HW], interp,
                                        preferred_element_type=jnp.float32)
        out_ref[0] = acc


# -----------------------------------------------------------------------------
# Forward wrapper (glue: branch merge, padding, im2col, weight re-layout, bias).
# -----------------------------------------------------------------------------
def shared_deform_conv_forward(xs, w_dcn, b_dcn, w_off, *, kernel_size, stride,
                               dilation, deformable_groups):
    ks = kernel_size
    k2 = ks * ks
    dg = deformable_groups
    nb = len(xs)
    assert nb == len(dilation)

    # branches must share shape to be merged; otherwise fall back to per-branch
    if not all(x.shape == xs[0].shape for x in xs):
        outs = []
        for br, x in enumerate(xs):
            outs += shared_deform_conv_forward(
                [x], w_dcn, b_dcn, w_off, kernel_size=ks, stride=stride,
                dilation=[dilation[br]], deformable_groups=dg)
        return outs

    # module stores the DCN weight as (dim_in, dim_out, ks, ks); dcn_v2_conv
    # interprets it as (C_out, C_in, kh, kw) — reproduced faithfully.
    c_out, c_in = w_dcn.shape[0], w_dcn.shape[1]
    cpg = c_in // dg
    c_out_p = _round_up(c_out, 8)

    num_filters = w_off.shape[0]                  # dg * 3 * k2
    c_in_off = w_off.shape[1]
    om_pad = _round_up(num_filters, 8)

    # ---- one-time parameter re-layout (XLA glue) ----------------------------
    # offset/mask conv weight -> (OMpad, K2*Cin), rows match im2col order k*Cin+c
    w_off_flat = jnp.transpose(w_off, (0, 2, 3, 1)).reshape(num_filters,
                                                            k2 * c_in_off)
    w_off_flat = jnp.pad(w_off_flat,
                         ((0, om_pad - num_filters), (0, 0))).astype(jnp.float32)

    # per-tap DCN weight, block-masked per deformable group, Cout padded to 8
    wt = jnp.transpose(w_dcn, (2, 3, 0, 1)).reshape(k2, c_out, c_in)
    wt = jnp.pad(wt, ((0, 0), (0, c_out_p - c_out), (0, 0)))
    wz = jnp.zeros((dg, k2, c_out_p, c_in), jnp.float32)
    for g in range(dg):
        sl = slice(g * cpg, (g + 1) * cpg)
        wz = wz.at[g, :, :, sl].set(wt[:, :, sl])
    wz = wz.reshape(dg * k2, c_out_p, c_in).astype(jnp.float32)

    # ---- merge the trident branches along the batch axis --------------------
    n, c, h, w = xs[0].shape
    assert c == c_in and c == c_in_off
    x_all = jnp.concatenate(xs, axis=0)                        # (nb*n, C, H, W)
    B = nb * n
    dil_arr = jnp.repeat(jnp.asarray(dilation, jnp.int32), n)  # (B,)

    pad_om = 1 if ks == 3 else 0                 # shared offset conv: dilation 1
    ho = (h + 2 * pad_om - (ks - 1) - 1) // stride + 1
    wo = (w + 2 * pad_om - (ks - 1) - 1) // stride + 1
    # DCN conv (pad=dil, dilation=dil, ks==3) gives the same (ho, wo) for any dil.
    p_out = ho * wo
    hw = h * w
    p_pad = _round_up(p_out, 128)
    tp = 512 if p_pad % 512 == 0 else (256 if p_pad % 256 == 0 else 128)
    n_pt = p_pad // tp
    taps = dg * k2

    # ---- im2col for the shared offset/mask conv -----------------------------
    # TODO(synk): im2col is still materialized XLA-side (~K2x input HBM traffic);
    # an in-kernel shifted-slice formulation needs a (Ho,Wo)->P lane relayout
    # per tap, which costs more than it saves at these shapes.
    x_pad = jnp.pad(x_all, ((0, 0), (0, 0), (pad_om, pad_om), (pad_om, pad_om)))
    cols = []
    for i in range(ks):
        for j in range(ks):
            sl = x_pad[:, :, i:i + (ho - 1) * stride + 1:stride,
                          j:j + (wo - 1) * stride + 1:stride]
            cols.append(sl.reshape(B, c, p_out))
    x_cols = jnp.stack(cols, axis=1).reshape(B, k2 * c, p_out).astype(jnp.float32)
    x_cols = jnp.pad(x_cols, ((0, 0), (0, 0), (0, p_pad - p_out)))

    # ---- stage 1: z in (Coutp, dg*K2*HW) layout, bf16, tiled over (b, tap) ---
    taps_pb = 1 if hw % 128 == 0 else taps       # lane-dense per-tap blocks if possible
    x_flat = x_all.reshape(B, c, hw).astype(jnp.float32)
    z = pl.pallas_call(
        functools.partial(_z_kernel, hw=hw, taps_pb=taps_pb),
        out_shape=jax.ShapeDtypeStruct((B, c_out_p, taps * hw), jnp.bfloat16),
        grid=(B, taps // taps_pb),
        in_specs=[
            pl.BlockSpec((1, c, hw), lambda b, t: (b, 0, 0)),
            pl.BlockSpec((taps_pb, c_out_p, c), lambda b, t: (t, 0, 0)),
        ],
        out_specs=pl.BlockSpec((1, c_out_p, taps_pb * hw), lambda b, t: (b, 0, t)),
        compiler_params=pltpu.CompilerParams(
            dimension_semantics=("parallel", "parallel"),
            vmem_limit_bytes=32 * 1024 * 1024),
        cost_estimate=pl.CostEstimate(
            flops=2 * B * taps * c_out_p * c * hw,
            transcendentals=0,
            bytes_accessed=4 * (int(x_flat.size) + int(wz.size))
                           + 2 * B * taps * c_out_p * hw),
    )(x_flat, wz)

    # ---- stage 2: fused offset conv + deformable sampling + projection ------
    stacked_bytes = taps * hw * tp * 2
    use_stacked = (stacked_bytes <= 12 * 1024 * 1024) and (hw % 16 == 0)
    bf16_interp = _bf16_interp_ok(w)
    dcn_kern = functools.partial(
        _dcn_kernel, H=h, W=w, Wo=wo, K=ks, stride=stride, dgroups=dg,
        cout_p=c_out_p, use_stacked=use_stacked, bf16_interp=bf16_interp)
    scratch_shapes = ([pltpu.VMEM((taps * hw, tp), jnp.bfloat16)]
                      if use_stacked else [])
    out = pl.pallas_call(
        dcn_kern,
        out_shape=jax.ShapeDtypeStruct((B, c_out_p, p_pad), jnp.float32),
        grid_spec=pltpu.PrefetchScalarGridSpec(
            num_scalar_prefetch=1,
            grid=(B, n_pt),
            in_specs=[
                pl.BlockSpec((1, k2 * c, tp), lambda b, p, d: (b, 0, p)),
                pl.BlockSpec((om_pad, k2 * c), lambda b, p, d: (0, 0)),
                pl.BlockSpec((1, c_out_p, taps * hw), lambda b, p, d: (b, 0, 0)),
            ],
            out_specs=pl.BlockSpec((1, c_out_p, tp), lambda b, p, d: (b, 0, p)),
            scratch_shapes=scratch_shapes),
        compiler_params=pltpu.CompilerParams(
            dimension_semantics=("parallel", "parallel"),
            vmem_limit_bytes=48 * 1024 * 1024),
        cost_estimate=pl.CostEstimate(
            flops=2 * B * c_out_p * taps * hw * p_pad
                  + 2 * B * om_pad * k2 * c * p_pad
                  + 2 * B * taps * hw * p_pad,
            transcendentals=B * taps * p_pad,
            bytes_accessed=4 * int(x_cols.size) + 4 * int(w_off_flat.size)
                           + 2 * int(z.size) + 4 * B * c_out_p * p_pad),
    )(dil_arr, x_cols, w_off_flat, z)

    out = out[:, :c_out, :p_out].reshape(B, c_out, ho, wo)
    out = out + b_dcn.astype(jnp.float32)[None, :, None, None]
    return [out[br * n:(br + 1) * n] for br in range(nb)]


# -----------------------------------------------------------------------------
# Pure-JAX reference (for correctness checking only)
# -----------------------------------------------------------------------------
def _dcn_ref(x, offset, mask_raw, wgt, b, stride, pad, dil, dg):
    n, _, hh, ww = x.shape
    c_out, c_in, k, _ = wgt.shape
    k2 = k * k
    ho = (hh + 2 * pad - dil * (k - 1) - 1) // stride + 1
    wo = (ww + 2 * pad - dil * (k - 1) - 1) // stride + 1
    cpg = c_in // dg
    mask = jax.nn.sigmoid(mask_raw)
    hog = jnp.arange(ho, dtype=jnp.float32)
    wog = jnp.arange(wo, dtype=jnp.float32)
    hg = jnp.arange(hh, dtype=jnp.float32)
    wg = jnp.arange(ww, dtype=jnp.float32)
    out = jnp.broadcast_to(b[None, :, None, None],
                           (n, c_out, ho, wo)).astype(jnp.float32)
    for g in range(dg):
        xg = x[:, g * cpg:(g + 1) * cpg]
        for i in range(k):
            for j in range(k):
                kidx = i * k + j
                oy = offset[:, g * 2 * k2 + 2 * kidx].reshape(n, ho, wo)
                ox = offset[:, g * 2 * k2 + 2 * kidx + 1].reshape(n, ho, wo)
                m = mask[:, g * k2 + kidx].reshape(n, ho, wo)
                py = hog[None, :, None] * stride - pad + i * dil + oy
                px = wog[None, None, :] * stride - pad + j * dil + ox
                wy = jnp.maximum(1.0 - jnp.abs(py[..., None] - hg), 0.0)
                wx = jnp.maximum(1.0 - jnp.abs(px[..., None] - wg), 0.0)
                sampled = jnp.einsum("nyxh,nyxw,nchw->ncyx", wy, wx, xg)
                wk = wgt[:, g * cpg:(g + 1) * cpg, i, j]
                out = out + jnp.einsum("oc,ncyx->noyx", wk, sampled * m[:, None])
    return out


def _forward_ref(xs, w_dcn, b_dcn, w_off, *, kernel_size, stride, dilation, dg):
    k = kernel_size
    k2 = k * k
    outs = []
    for br, x in enumerate(xs):
        pad_om = 1 if k == 3 else 0
        om = jax.lax.conv_general_dilated(
            x, w_off, window_strides=(stride, stride),
            padding=((pad_om, pad_om), (pad_om, pad_om)),
            dimension_numbers=("NCHW", "OIHW", "NCHW"))
        n, _, ho, wo = om.shape
        o1 = om[:, :dg * k2]
        o2 = om[:, dg * k2:2 * dg * k2]
        mr = om[:, 2 * dg * k2:]
        offset = jnp.concatenate([o1, o2], axis=1).reshape(n, 2 * dg * k2, ho * wo)
        mr = mr.reshape(n, dg * k2, ho * wo)
        dil = dilation[br]
        pad_dcn = dil if k == 3 else 0
        outs.append(_dcn_ref(x, offset, mr, w_dcn, b_dcn, stride, pad_dcn, dil, dg))
    return outs


if __name__ == "__main__":
    # Note: the PyTorch module stores the DCN weight as (dim_in, dim_out, k, k)
    # and hands it straight to dcn_v2_conv, which only type-checks when
    # dim_in == dim_out; we keep them equal.  Its reset_parameters is broken
    # (references self.in_channels), so parameters are synthesized here.
    dim_in = 4
    dim_out = 4
    ks = 3
    stride = 1
    dilation = [1, 2, 3]
    dg = 1
    N, H, W = 2, 16, 16

    key = jax.random.PRNGKey(0)
    kx1, kx2, kx3, kw, kwo = jax.random.split(key, 5)
    xs = [jax.random.normal(kk, (N, dim_in, H, W), jnp.float32)
          for kk in (kx1, kx2, kx3)]

    stdv = 1.0 / math.sqrt(dim_in * ks * ks)
    w_dcn = jax.random.uniform(kw, (dim_in, dim_out, ks, ks), jnp.float32,
                               -stdv, stdv)
    b_dcn = jnp.zeros((dim_out,), jnp.float32)          # bias.zero_()
    num_filters = dg * 3 * ks * ks
    w_off = jax.random.uniform(kwo, (num_filters, dim_in, ks, ks), jnp.float32,
                               -0.1, 0.1)

    outs = shared_deform_conv_forward(
        xs, w_dcn, b_dcn, w_off, kernel_size=ks, stride=stride,
        dilation=dilation, deformable_groups=dg)
    outs = [jax.block_until_ready(o) for o in outs]

    refs = _forward_ref(xs, w_dcn, b_dcn, w_off, kernel_size=ks, stride=stride,
                        dilation=dilation, dg=dg)
    for o, r in zip(outs, refs):
        assert o.shape == r.shape, (o.shape, r.shape)
        err = float(jnp.max(jnp.abs(o - r)))
        # bf16 MXU path on z / masked-interp -> allow ~3e-2
        if not jnp.allclose(o, r, atol=3e-2, rtol=3e-2):
            raise AssertionError("mismatch vs reference, max abs err = %g" % err)

    print("KERNEL_OK")
</pallas_src>

<mosaic_0001>
module attributes {stable_mosaic.version = 11 : i64} {
  func.func @_z_kernel(%arg0: i32, %arg1: i32, %arg2: memref<1x4x256xf32, #tpu.memory_space<vmem>>, %arg3: memref<1x8x4xf32, #tpu.memory_space<vmem>>, %arg4: memref<1x8x256xbf16, #tpu.memory_space<vmem>>) attributes {dimension_semantics = [#tpu.dimension_semantics<parallel>, #tpu.dimension_semantics<parallel>], iteration_bounds = array<i64: 6, 9>, scalar_prefetch = 0 : i64, scratch_operands = 0 : i64, tpu.core_type = #tpu.core_type<tc>, window_params = [{transform_indices = @transform_0, window_bounds = array<i64: 1, 4, 256>}, {transform_indices = @transform_1, window_bounds = array<i64: 1, 8, 4>}, {transform_indices = @transform_2, window_bounds = array<i64: 1, 8, 256>}]} {
    %c0 = arith.constant 0 : index
    %c0_0 = arith.constant 0 : index
    %c0_1 = arith.constant 0 : index
    %0 = vector.load %arg3[%c0, %c0_0, %c0_1] : memref<1x8x4xf32, #tpu.memory_space<vmem>>, vector<1x8x4xf32>
    %1 = vector.shape_cast %0 : vector<1x8x4xf32> to vector<8x4xf32>
    %c0_2 = arith.constant 0 : index
    %c0_3 = arith.constant 0 : index
    %c0_4 = arith.constant 0 : index
    %2 = vector.load %arg2[%c0_2, %c0_3, %c0_4] : memref<1x4x256xf32, #tpu.memory_space<vmem>>, vector<1x4x256xf32>
    %3 = vector.shape_cast %2 : vector<1x4x256xf32> to vector<4x256xf32>
    %cst = arith.constant dense<0.000000e+00> : vector<8x256xf32>
    %4 = tpu.matmul %1, %3, %cst {dimension_numbers = #tpu.dot_dimension_numbers<[1], [0], [0], [1], [0, 0, 1, 1], [], []>} : vector<8x4xf32>, vector<4x256xf32>, vector<8x256xf32> -> vector<8x256xf32>
    %5 = arith.truncf %4 : vector<8x256xf32> to vector<8x256xbf16>
    %c0_5 = arith.constant 0 : index
    %c0_6 = arith.constant 0 : index
    %c0_7 = arith.constant 0 : index
    %6 = vector.load %arg4[%c0_5, %c0_6, %c0_7] : memref<1x8x256xbf16, #tpu.memory_space<vmem>>, vector<1x8x256xbf16>
    %7 = vector.shape_cast %6 : vector<1x8x256xbf16> to vector<8x256xbf16>
    %8 = vector.shape_cast %5 : vector<8x256xbf16> to vector<1x8x256xbf16>
    tpu.vector_store %arg4[%c0_5, %c0_6, %c0_7], %8 {strides = array<i32>} : memref<1x8x256xbf16, #tpu.memory_space<vmem>>, vector<1x8x256xbf16>,
    return
  }
  func.func @transform_0(%arg0: i32, %arg1: i32) -> (i32, i32, i32) {
    %c0_i32 = arith.constant 0 : i32
    %c0_i32_0 = arith.constant 0 : i32
    %c0_i32_1 = arith.constant 0 : i32
    return %arg0, %c0_i32, %c0_i32_0 : i32, i32, i32
  }
  func.func @transform_1(%arg0: i32, %arg1: i32) -> (i32, i32, i32) {
    %c0_i32 = arith.constant 0 : i32
    %c0_i32_0 = arith.constant 0 : i32
    %c0_i32_1 = arith.constant 0 : i32
    return %arg1, %c0_i32, %c0_i32_0 : i32, i32, i32
  }
  func.func @transform_2(%arg0: i32, %arg1: i32) -> (i32, i32, i32) {
    %c0_i32 = arith.constant 0 : i32
    %c0_i32_0 = arith.constant 0 : i32
    return %arg0, %c0_i32, %arg1 : i32, i32, i32
  }
}

</mosaic_0001>

<bundles_post_ra>
// kernel: tpu_custom_call.1
= control target key start
LH: loop header
LB: loop body
LE: loop exit
PB: predicated region body
PF: predicated region fallthrough
CT: control target
= control target key end

     0   :  { %7 = vsyncpa [#allocation3], 0  ;;  %s716_s0 = inlined_call_operand.vmem [shape: f32[6,4,256], index: 0, kind: input, shape index: {}]   ;;  %s717_s1 = inlined_call_operand.vmem [shape: f32[9,8,4], index: 1, kind: input, shape index: {}]   ;;  %s718_s2 = inlined_call_operand.hbm [shape: bf16[6,8,2304], index: 2, kind: output, shape index: {}]  }
   0x1   :  { %9 = vsyncpa [#allocation3 + $0x1], 0  ;;  %s576_s9 = smov 0   ;;  %s578_s10 = smov 0  }
   0x2   :  { %s580_s11 = smov 0   ;;  %s582_s12 = smov 0  }
   0x3   :  { %s584_s13 = smov 0   ;;  %s586_s14 = smov 0  }
   0x4   :  { %s588_s15 = smov 0   ;;  %s590_s16 = smov 0  }
   0x5 LB: > { %s369_s17 = sadd.s32 4294967295, %s557_s16   ;;  %s370_s18 = sadd.s32 4294967294, %s557_s16   ;;  %s557_s16 = sphi %s590_s16, %s15_s16   ;;  %s553_s15 = sphi %s588_s15, %s727_s15   ;;  %s549_s14 = sphi %s586_s14, %s726_s14   ;;  %s545_s13 = sphi %s584_s13, %s725_s13   ;;  %s541_s12 = sphi %s582_s12, %s724_s12   ;;  %s537_s11 = sphi %s580_s11, %s723_s11   ;;  %s533_s10 = sphi %s578_s10, %s722_s10   ;;  %s529_s9 = sphi %s576_s9, %s721_s9  }
   0x6   : > { %s24_s19 = sadd.s32 1, %s549_s14  ;;  %s27_s20 = sadd.s32 1, %s553_s15 }
   0x7   : > { %p25_p0 = scmp.ge.s32.totalorder %s24_s19, 9  ;;  %p98_p1 = scmp.ne.s32.totalorder %s537_s11, %s533_s10 }
   0x8   : > { %p99_p2 = scmp.eq.s32.totalorder %s369_s17, 53  ;;  %p104_p5 = scmp.ne.s32.totalorder %s533_s10, %s529_s9 }
   0x9   : > { %s729_s19 = smov (%p25_p0, %s24_s19), 0  ;;  %s731_s20 = smov (!%p25_p0, %s27_s20), %s553_s15 }
   0xa   : > { %s84_s21 = ssub.s32 %s549_s14, %s729_s19  ;;  %p627_p3 = por %p99_p2, %p98_p1 }
   0xb   : > { %p29_p4 = scmp.ge.s32.totalorder %s731_s20, 6  ;;  %p105_p6 = scmp.eq.s32.totalorder %s370_s18, 53 }
   0xc   : > { %p373_p7 = scmp.ge.s32.totalorder %s557_s16, 1  ;;  %p138_p9 = scmp.lt.s32.totalorder %s557_s16, 55 }
   0xd   : > { %s733_s20 = smov (%p29_p4, %s731_s20), 0  ;;  %p636_p8 = por %p105_p6, %p104_p5 }
   0xe   : > { %s83_s24 = ssub.s32 %s553_s15, %s733_s20  ;;  %s88_s25 = sadd.s32 1, %s537_s11 }
   0xf   : > { %s85_s26 = sor.u32 %s84_s21, %s83_s24  ;;  %p139_p10 = pnand %p373_p7, %p138_p9 }
  0x10   : > { %p86_p11 = scmp.eq.s32.totalorder %s85_s26, 0  ;;  %p164_p12 = scmp.lt.s32.totalorder (!%p139_p10), %s545_s13, 5  ;;  %v559_v0 = vmov (!%p139_p10), 0.0   ;;  %vm182_vm0 = vcmask (!%p139_p10), 1043456   ;;  %vm178_vm1 = vcmask (!%p139_p10), 31744  }
  0x11   : > { %142 = sbr.rel (%p139_p10) target bundleno = 262 (0x106), region = 28  ;;  %p169_p13 = scmp.lt.s32.totalorder (!%p139_p10), %s541_s12, 8  ;;  %251 = vmatprep.mubr.f32.mxu0 (!%p139_p10), %v559_v0 }
  0x12   : > { %s645_s27 = scalar_select %p86_p11, %s537_s11, %s88_s25  }
  0x13   : > { %s161_s18 = sand.u32 (!%p139_p10), 1, %s533_s10   ;;  %s389_s21 = smul.u32 (!%p139_p10), 18, %s545_s13 }
  0x14   : > { %s374_s24 = sshll.u32 (!%p139_p10), %s161_s18, 3  ;;  %s383_s25 = sshll.u32 (!%p139_p10), %s541_s12, 1 }
  0x15   : > { %s280_s26 = sadd.s32 (!%p139_p10), %s389_s21, %s383_s25 }
  0x18   : > { %s165_s28 = scalar_select %p164_p12, %s545_s13, 5 }
  0x19   : > { %s170_s29 = scalar_select %p169_p13, %s541_s12, 8 }
  0x1a   : > { %s387_s30 = sshll.u32 %s165_s28, 3  ;;  %s384_s28 = sshll.u32 %s280_s26, 6 }
  0x1b   : > { %s168_s5 = scalar_lea.vmem %s716_s0, %s387_s30  ;;  %s377_s6 = sshll.u32 %s170_s29, 3 }
  0x1c   : > { %v175_v1 = vld [vmem:[%s168_s5] sm:$0xff]  ;;  %s172_s17 = scalar_lea.vmem %s717_s1, %s377_s6  ;;  %s163_s29 = scalar_lea.vmem [#allocation2], %s374_s24 }
  0x1d   : > { %v177_v2 = vcombine.high %v175_v1, %v175_v1  ;;  %v174_v3 = vld [vmem:[%s172_s17] sm:$0xff]  ;;  %s284_s30 = sshll.u32 %s163_s29, 4  ;;  %s663_s5 = scalar_lea.hbm %s718_s2, %s384_s28  ;;  %s665_s30 = int_to_ptr.vmem [resolvable:$true] %s284_s30 }
  0x1e   : > { %s268_s13 = scalar_lea.sflag [#allocation3], %s161_s18  ;;  %s463_s12 = scalar_lea.vmem %s665_s30, 128 }
  0x1f   : > { %378 = vmatprep.subr.msk.mxu0 %vm182_vm0, %v177_v2  ;;  %p464_p0 = scmp.ne.s32.totalorder %s665_s30, %s463_s12  ;;  %s560_s6 = smov [#allocation2]  }
  0x20   : > { %379 = vmatpush1.msk.msra.mxu0 %vm182_vm0, %v175_v1  ;;  %s467_s7 = sshll.u32 %s560_s6, 4  ;;  %s468_s7 = int_to_ptr.vmem [resolvable:$false] %s467_s7 }
  0x21   : > { %380 = vmatmul.mubr.msk.f32.vlgmr.msra.gmra.mrb[0].mxu0 %vm178_vm1, %v174_v3  ;;  %p465_p1 = pnand %p464_p0, %p627_p3  ;;  %s469_s8 = scalar_lea.vmem %s468_s7, 256 }
  0x22   : > { %p470_p4 = scmp.lt.s32.totalorder %s665_s30, %s468_s7  ;;  %p471_p5 = scmp.lt.s32.totalorder %s469_s8, %s463_s12 }
  0x23   : > { %p466_p2 = pneg %p465_p1 }
  0x24   : > { %p472_p6 = por %p471_p5, %p470_p4 }
  0x26   : > { %p473_p7 = pnand %p472_p6, %p466_p2 }
  0xf4   : > { %v253_v4 = vpop.f32.mrb[0].mxu0 }
  0xf5   : > { %v255_v5 = vpop.f32.mrb[1].mxu0 }
  0xf6   : > { %v388_v6 = vpack.c.bf16 %v255_v5, %v253_v4 }
  0xf8   : > { %266 = vst [vmem:[%s163_s29] sm:$0xff] %v388_v6 }
  0xf9   : > { %476 = shalt.err (!%p473_p7)
}
  0xfa   : > { %s477_s17 = scalar_lea.hbm %s663_s5, 128  ;;  %s481_s24 = scalar_lea.hbm %s718_s2, 6912 }
  0xfb   : > { %p478_p9 = scmp.ne.s32.totalorder %s663_s5, %s477_s17  ;;  %p482_p12 = scmp.lt.u32.totalorder %s663_s5, %s718_s2 }
  0xfc   : > { %p483_p13 = scmp.lt.u32.totalorder %s481_s24, %s477_s17  ;;  %p485_p1 = scmp.lt.u32.totalorder %s477_s17, %s663_s5 }
  0xfd   : > { %p479_p10 = pnand %p478_p9, %p627_p3 }
  0xfe   : > { %p484_p0 = por %p483_p13, %p482_p12 }
  0xff   : > { %p480_p11 = pneg %p479_p10 }
 0x100   : > { %p486_p2 = por %p485_p1, %p484_p0 }
 0x102   : > { %p487_p4 = pnand %p486_p2, %p480_p11 }
 0x104   : > { %490 = shalt.err (!%p487_p4)
}
 0x105   : > { %390 = dma.vmem_to_hbm [thread:$0]  (%p627_p3), %s665_s30, 128, %s663_s5, %s268_s13  }
 0x106 PF: > { %p396_p5 = scmp.ge.s32.totalorder %s557_s16, 2  ;;  %s296_s28 = sand.u32 1, %s529_s9  }
 0x107   : > { %s297_s29 = scalar_lea.sflag [#allocation3], %s296_s28 }
 0x108   : > { %p393_p6 = pnand %p396_p5, %p636_p8 }
 0x10a   : > { %524 = dma.done.wait (!%p393_p6), %s297_s29, 128  }
 0x10b   : > { %526 = vsyncadd (!%p393_p6), %s297_s29, 4294967168  ;;  %s15_s16 = sadd.s32 1, %s557_s16   ;;  %s721_s9 = smov %s533_s10 }
 0x10c   : > { %p12_p7 = scmp.ge.s32.totalorder %s15_s16, 56   ;;  %s722_s10 = smov %s537_s11 }
 0x10d   : > { %s723_s11 = smov %s645_s27  ;;  %s724_s12 = smov %s549_s14 }
 0x10e   : > { %s725_s13 = smov %s553_s15  ;;  %s726_s14 = smov %s729_s19 }
 0x10f   : > { %s727_s15 = smov %s733_s20  ;;  %14 = sbr.rel (!%p12_p7) target bundleno = 5 (0x5), region = 66 }
 0x116   :  { %302 = vsyncpa [#allocation3], 1 }
 0x117   :  { %304 = vsyncpa [#allocation3 + $0x1], 1 }

</bundles_post_ra>
